<compile_context>
chip_gen: v7x
topology: tpu7x:2x2x1
jax: 0.10.0
libtpu: 0.0.40
codegen_flags: <defaults>
</compile_context>

<pallas_src>
import functools

import jax
import jax.numpy as jnp
from jax.experimental import pallas as pl
from jax.experimental.pallas import tpu as pltpu


def _round_up(n, m):
    return ((n + m - 1) // m) * m


def mlp_kernel(xT_ref, w1_ref, b1_ref, w2_ref, b2_ref, oT_ref, *, mxu_dtype):
    # xT_ref: [F, TILE_N]   w1_ref: [H, F]   b1_ref: [H, 1]
    # w2_ref: [O, H]        b2_ref: [O, 1]   oT_ref: [O, TILE_N]
    xT = xT_ref[...]
    w1 = w1_ref[...]
    if xT.dtype != mxu_dtype:
        xT = xT.astype(mxu_dtype)
    if w1.dtype != mxu_dtype:
        w1 = w1.astype(mxu_dtype)

    # ---- Layer 1 on the MXU: [H, F] @ [F, TILE_N] -> [H, TILE_N], f32 acc.
    # F is tiny (MXU padding), but the MXU is the idle unit; keeping this off
    # the VPU removes the saturating VALU slot.
    h = jnp.dot(w1, xT, preferred_element_type=jnp.float32)
    h = jnp.maximum(h + b1_ref[...], 0.0)          # bias + ReLU on the VPU

    # ---- Layer 2 on the MXU: [O, H] @ [H, TILE_N] -> [O, TILE_N], f32 acc.
    w2 = w2_ref[...]
    if w2.dtype != mxu_dtype:
        w2 = w2.astype(mxu_dtype)
    out = jnp.dot(w2, h.astype(mxu_dtype), preferred_element_type=jnp.float32)
    out = out + b2_ref[...]
    oT_ref[...] = out.astype(oT_ref.dtype)


def prepare_params(w1, b1, w2, b2):
    """One-time param prep (outside the per-call path).

    Weights stay in native PyTorch layout ([out, in]); biases become column
    vectors for the transposed (batch-on-lanes) layout.
    """
    H = w1.shape[0]
    O = w2.shape[0]
    return (w1, b1.reshape(H, 1).astype(jnp.float32),
            w2, b2.reshape(O, 1).astype(jnp.float32))


@functools.partial(jax.jit, static_argnames=("tile_n_cap", "input_dtype"))
def net_forward(x, params, *, tile_n_cap=65536, input_dtype=None):
    """x: [N, F]; params from prepare_params(). Returns [N, O].

    input_dtype: optional (e.g. jnp.bfloat16) — the dtype x^T is fed to the
    kernel in and the MXU operand dtype; accumulation stays f32.
    """
    w1, b1c, w2, b2c = params
    N, F = x.shape
    H = w1.shape[0]
    O = w2.shape[0]

    in_dt = jnp.dtype(input_dtype) if input_dtype is not None else x.dtype
    mxu_dtype = jnp.bfloat16 if in_dt == jnp.dtype(jnp.bfloat16) else jnp.float32

    # ---- Batch tile selection (lane-aligned, large enough to amortize the
    # ~0.35 us per-grid-step overhead, small enough for v7x's 64 MiB VMEM).
    n_pad128 = _round_up(N, 128)
    tile_n = min(tile_n_cap, n_pad128)
    if n_pad128 >= 256:
        # Ensure >= 2 grid steps so the "parallel" axis can shard across both
        # v7x TensorCores (a single mega-tile would leave one TC idle).
        half = max(128, _round_up((n_pad128 + 1) // 2, 128))
        tile_n = min(tile_n, half)
    tile_n = _round_up(tile_n, 128)
    n_padded = _round_up(N, tile_n)

    # ---- VMEM budget: double-buffered x/out tiles + f32 hidden (+ temps).
    per_col_bytes = (2 * F * jnp.dtype(in_dt).itemsize      # x^T tile (2 bufs)
                     + 2 * O * x.dtype.itemsize             # out tile (2 bufs)
                     + 2 * H * 4)                           # f32 hidden + temps
    vmem_limit = int(min(max(per_col_bytes * tile_n * 2, 32 << 20), 48 << 20))

    # ---- Fused pad+transpose (single op under jit): [F, n_padded], zeros tail.
    xT = jnp.zeros((F, n_padded), in_dt).at[:, :N].set(x.T.astype(in_dt))

    kernel = functools.partial(mlp_kernel, mxu_dtype=mxu_dtype)
    outT = pl.pallas_call(
        kernel,
        out_shape=jax.ShapeDtypeStruct((O, n_padded), x.dtype),
        grid=(n_padded // tile_n,),
        in_specs=[
            pl.BlockSpec((F, tile_n), lambda i: (0, i)),   # x^T tile
            pl.BlockSpec((H, F), lambda i: (0, 0)),        # W1 (resident)
            pl.BlockSpec((H, 1), lambda i: (0, 0)),        # b1
            pl.BlockSpec((O, H), lambda i: (0, 0)),        # W2 (resident)
            pl.BlockSpec((O, 1), lambda i: (0, 0)),        # b2
        ],
        out_specs=pl.BlockSpec((O, tile_n), lambda i: (0, i)),
        compiler_params=pltpu.CompilerParams(
            dimension_semantics=("parallel",),
            vmem_limit_bytes=vmem_limit),
    )(xT, w1, b1c, w2, b2c)

    # Padded tail columns carry garbage (relu(b1)·W2 + b2); always slice.
    return outT[:, :N].T                     # back to [N, O]


def init_linear(key, out_features, in_features):
    """Deterministic init mimicking torch.nn.Linear default U(-1/sqrt(in), 1/sqrt(in))."""
    kw, kb = jax.random.split(key)
    bound = 1.0 / (in_features ** 0.5)
    w = jax.random.uniform(kw, (out_features, in_features), jnp.float32,
                           minval=-bound, maxval=bound)
    b = jax.random.uniform(kb, (out_features,), jnp.float32,
                           minval=-bound, maxval=bound)
    return w, b


if __name__ == "__main__":
    # Shapes consistent with the module's two-feature classification data:
    # batch=200 (100 per blob), n_feature=2, n_hidden=32, n_output=2.
    N, n_feature, n_hidden, n_output = 200, 2, 32, 2

    key = jax.random.PRNGKey(0)
    k0, k1, k_h, k_p = jax.random.split(key, 4)

    # Gaussian blobs at +2 / -2 (independent noise per blob).
    x0 = 2.0 + jax.random.normal(k0, (N // 2, n_feature), jnp.float32)
    x1 = -2.0 + jax.random.normal(k1, (N // 2, n_feature), jnp.float32)
    x = jnp.concatenate([x0, x1], axis=0)

    w1, b1 = init_linear(k_h, n_hidden, n_feature)   # self.hidden
    w2, b2 = init_linear(k_p, n_output, n_hidden)    # self.predict

    params = prepare_params(w1, b1, w2, b2)          # one-time prep

    # Reference in plain JAX.
    ref = jnp.maximum(x @ w1.T + b1, 0.0) @ w2.T + b2

    # f32 path (exact check).
    out = jax.block_until_ready(net_forward(x, params))
    assert out.shape == (N, n_output)
    assert jnp.allclose(out, ref, atol=1e-5, rtol=1e-5)

    # bf16 input / bf16 MXU-operand path (f32 accumulation) — looser tolerance.
    out_bf16 = jax.block_until_ready(
        net_forward(x, params, input_dtype=jnp.bfloat16))
    assert out_bf16.shape == (N, n_output)
    assert jnp.allclose(out_bf16, ref, atol=5e-2, rtol=5e-2)

    print("KERNEL_OK")
</pallas_src>

<mosaic_0001>
module attributes {stable_mosaic.version = 11 : i64} {
  func.func @mlp_kernel(%arg0: i32, %arg1: memref<2x128xf32, #tpu.memory_space<vmem>>, %arg2: memref<32x2xf32, #tpu.memory_space<vmem>>, %arg3: memref<32x1xf32, #tpu.memory_space<vmem>>, %arg4: memref<2x32xf32, #tpu.memory_space<vmem>>, %arg5: memref<2x1xf32, #tpu.memory_space<vmem>>, %arg6: memref<2x128xf32, #tpu.memory_space<vmem>>) attributes {dimension_semantics = [#tpu.dimension_semantics<parallel>], iteration_bounds = array<i64: 2>, scalar_prefetch = 0 : i64, scratch_operands = 0 : i64, tpu.core_type = #tpu.core_type<tc>, window_params = [{transform_indices = @transform_0, window_bounds = array<i64: 2, 128>}, {pipeline_mode = #tpu.pipeline_mode<synchronous>, transform_indices = @transform_1, window_bounds = array<i64: 32, 2>}, {pipeline_mode = #tpu.pipeline_mode<synchronous>, transform_indices = @transform_2, window_bounds = array<i64: 32, 1>}, {pipeline_mode = #tpu.pipeline_mode<synchronous>, transform_indices = @transform_3, window_bounds = array<i64: 2, 32>}, {pipeline_mode = #tpu.pipeline_mode<synchronous>, transform_indices = @transform_4, window_bounds = array<i64: 2, 1>}, {transform_indices = @transform_5, window_bounds = array<i64: 2, 128>}]} {
    %c0 = arith.constant 0 : index
    %c0_0 = arith.constant 0 : index
    %0 = vector.load %arg1[%c0, %c0_0] : memref<2x128xf32, #tpu.memory_space<vmem>>, vector<2x128xf32>
    %c0_1 = arith.constant 0 : index
    %c0_2 = arith.constant 0 : index
    %1 = vector.load %arg2[%c0_1, %c0_2] : memref<32x2xf32, #tpu.memory_space<vmem>>, vector<32x2xf32>
    %cst = arith.constant dense<0.000000e+00> : vector<32x128xf32>
    %2 = tpu.matmul %1, %0, %cst {dimension_numbers = #tpu.dot_dimension_numbers<[1], [0], [0], [1], [0, 0, 1, 1], [], []>} : vector<32x2xf32>, vector<2x128xf32>, vector<32x128xf32> -> vector<32x128xf32>
    %c0_3 = arith.constant 0 : index
    %c0_4 = arith.constant 0 : index
    %3 = vector.load %arg3[%c0_3, %c0_4] : memref<32x1xf32, #tpu.memory_space<vmem>>, vector<32x1xf32>
    %4 = vector.broadcast %3 : vector<32x1xf32> to vector<32x128xf32>
    %5 = arith.addf %2, %4 : vector<32x128xf32>
    %cst_5 = arith.constant 0.000000e+00 : f32
    %6 = vector.broadcast %cst_5 : f32 to vector<32x128xf32>
    %7 = arith.maximumf %5, %6 : vector<32x128xf32>
    %c0_6 = arith.constant 0 : index
    %c0_7 = arith.constant 0 : index
    %8 = vector.load %arg4[%c0_6, %c0_7] : memref<2x32xf32, #tpu.memory_space<vmem>>, vector<2x32xf32>
    %cst_8 = arith.constant dense<0.000000e+00> : vector<2x128xf32>
    %9 = tpu.matmul %8, %7, %cst_8 {dimension_numbers = #tpu.dot_dimension_numbers<[1], [0], [0], [1], [0, 0, 1, 1], [], []>} : vector<2x32xf32>, vector<32x128xf32>, vector<2x128xf32> -> vector<2x128xf32>
    %c0_9 = arith.constant 0 : index
    %c0_10 = arith.constant 0 : index
    %10 = vector.load %arg5[%c0_9, %c0_10] : memref<2x1xf32, #tpu.memory_space<vmem>>, vector<2x1xf32>
    %11 = vector.broadcast %10 : vector<2x1xf32> to vector<2x128xf32>
    %12 = arith.addf %9, %11 : vector<2x128xf32>
    %c0_11 = arith.constant 0 : index
    %c0_12 = arith.constant 0 : index
    %13 = vector.load %arg6[%c0_11, %c0_12] : memref<2x128xf32, #tpu.memory_space<vmem>>, vector<2x128xf32>
    tpu.vector_store %arg6[%c0_11, %c0_12], %12 {strides = array<i32>} : memref<2x128xf32, #tpu.memory_space<vmem>>, vector<2x128xf32>,
    return
  }
  func.func @transform_0(%arg0: i32) -> (i32, i32) {
    %c0_i32 = arith.constant 0 : i32
    %c0_i32_0 = arith.constant 0 : i32
    return %c0_i32, %arg0 : i32, i32
  }
  func.func @transform_1(%arg0: i32) -> (i32, i32) {
    %c0_i32 = arith.constant 0 : i32
    %c0_i32_0 = arith.constant 0 : i32
    %c0_i32_1 = arith.constant 0 : i32
    return %c0_i32, %c0_i32_0 : i32, i32
  }
  func.func @transform_2(%arg0: i32) -> (i32, i32) {
    %c0_i32 = arith.constant 0 : i32
    %c0_i32_0 = arith.constant 0 : i32
    %c0_i32_1 = arith.constant 0 : i32
    return %c0_i32, %c0_i32_0 : i32, i32
  }
  func.func @transform_3(%arg0: i32) -> (i32, i32) {
    %c0_i32 = arith.constant 0 : i32
    %c0_i32_0 = arith.constant 0 : i32
    %c0_i32_1 = arith.constant 0 : i32
    return %c0_i32, %c0_i32_0 : i32, i32
  }
  func.func @transform_4(%arg0: i32) -> (i32, i32) {
    %c0_i32 = arith.constant 0 : i32
    %c0_i32_0 = arith.constant 0 : i32
    %c0_i32_1 = arith.constant 0 : i32
    return %c0_i32, %c0_i32_0 : i32, i32
  }
  func.func @transform_5(%arg0: i32) -> (i32, i32) {
    %c0_i32 = arith.constant 0 : i32
    %c0_i32_0 = arith.constant 0 : i32
    return %c0_i32, %arg0 : i32, i32
  }
}

</mosaic_0001>

<bundles_post_ra>
// kernel: net_forward.1
= control target key start
LH: loop header
LB: loop body
LE: loop exit
PB: predicated region body
PF: predicated region fallthrough
CT: control target
= control target key end

     0   :  { %s596_s18 = smov 0   ;;  %s654_s0 = inlined_call_operand.vmem [shape: f32[2,256], index: 0, kind: input, shape index: {}]   ;;  %s655_s1 = inlined_call_operand.vmem [shape: f32[32,2], index: 1, kind: input, shape index: {}]   ;;  %s656_s2 = inlined_call_operand.vmem [shape: f32[32,1], index: 2, kind: input, shape index: {}]   ;;  %s657_s3 = inlined_call_operand.vmem [shape: f32[2,32], index: 3, kind: input, shape index: {}]   ;;  %s658_s4 = inlined_call_operand.vmem [shape: f32[2,1], index: 4, kind: input, shape index: {}]   ;;  %s659_s5 = inlined_call_operand.vmem [shape: f32[2,256], index: 5, kind: output, shape index: {}]  }
   0x1 LB: > { %s490_s19 = sadd.s32 4294967295, %s560_s18   ;;  %p494_p0 = scmp.ge.s32.totalorder %s560_s18, 1  ;;  %s560_s18 = sphi %s596_s18, %s15_s18  }
   0x2   : > { %p186_p1 = scmp.lt.s32.totalorder %s560_s18, 3 }
   0x4   : > { %p187_p2 = pnand %p494_p0, %p186_p1 }
   0x5   : > { %p212_p3 = scmp.lt.s32.totalorder (!%p187_p2), %s490_s19, 1  ;;  %v221_v0 = vld [vmem:[%s655_s1] sm:$0xff] (!%p187_p2)  ;;  %vm249_vm0 = vcmask (!%p187_p2), 15360   ;;  %v562_v2 = vmov (!%p187_p2), 0   ;;  %v227_v3 = vld [vmem:[%s656_s2 + $0x10] sm:$0xff] (!%p187_p2)  ;;  %vm262_vm1 = vcmask (!%p187_p2), 1041408  }
   0x6   : > { %190 = sbr.rel (%p187_p2) target bundleno = 460 (0x1cc), region = 40  ;;  %517 = vmatprep.mubr.msk.f32.mxu0 (!%p187_p2), %vm249_vm0, %v221_v0  ;;  %v225_v1 = vld [vmem:[%s656_s2] sm:$0xff] (!%p187_p2)  ;;  %552 = vset.pattern.permute.xlu0 (!%p187_p2), %v562_v2  ;;  %v226_v4 = vld [vmem:[%s656_s2 + $0x8] sm:$0xff] (!%p187_p2)  ;;  %v228_v5 = vld [vmem:[%s656_s2 + $0x18] sm:$0xff] (!%p187_p2)  ;;  %v563_v11 = vmov (!%p187_p2), 0.0|0.0   ;;  %vm564_vm2 = vmmov (!%p187_p2), 0  }
   0x7   : > { %553 = vset.pattern.permute.xlu1 (!%p187_p2), %v562_v2  ;;  %231 = vperm.xlu0 (!%p187_p2), %552, %v225_v1   ;;  %v222_v7 = vld [vmem:[%s655_s1 + $0x8] sm:$0xff] (!%p187_p2)  ;;  %v223_v8 = vld [vmem:[%s655_s1 + $0x10] sm:$0xff] (!%p187_p2)  ;;  %v356_v9 = vld [vmem:[%s658_s4] sm:$0x3] (!%p187_p2)  ;;  %v565_v12 = vmov (!%p187_p2), 0.0   ;;  %vm362_vm3 = vcmask (!%p187_p2), 261120  }
   0x8   : > { %241 = vperm.xlu1 (!%p187_p2), %553, %v227_v3   ;;  %v224_v10 = vld [vmem:[%s655_s1 + $0x18] sm:$0xff] (!%p187_p2)  ;;  %534 = vmatprep.subr.bf16.mxu1 (!%p187_p2), %v563_v11  ;;  %v355_v31 = vld [vmem:[%s657_s3] sm:$0x3] (!%p187_p2) }
   0x9   : > { %531 = vmatprep.mubr.msk.f32.mxu1 (!%p187_p2), %vm564_vm2, %v565_v12 }
   0xb   : > { %236 = vperm.xlu0 (!%p187_p2), %552, %v226_v4  }
   0xc   : > { %246 = vperm.xlu1 (!%p187_p2), %553, %v228_v5  }
   0xd   : > { %s661_s19 = smov (!%p212_p3, %s490_s19), 1 }
   0xe   : > { %s495_s26 = sshll.u32 %s661_s19, 1 }
   0xf   : > { %s215_s6 = scalar_lea.vmem %s654_s0, %s495_s26  ;;  %359 = vperm.xlu0 %552, %v356_v9   ;;  %s219_s23 = scalar_lea.vmem %s659_s5, %s495_s26 }
  0x10   : > { %v220_v6 = vld [vmem:[%s215_s6] sm:$0x3] }
  0x11   : > { %515 = vmatprep.subr.msk.mxu0 %vm262_vm1, %v220_v6 }
  0x12   : > { %516 = vmatpush3.msk.msra.mxu0 %vm262_vm1, %v220_v6 }
  0x13   : > { %518 = vmatmul.mubr.msk.f32.vlgmr.msra.gmra.mrb[0].mxu0 %vm249_vm0, %v222_v7 }
  0x14   : > { %520 = vmatprep.mubr.msk.f32.mxu0 %vm249_vm0, %v223_v8 }
  0x17   : > { %521 = vmatmul.mubr.msk.f32.gmra.mrb[2].mxu0 %vm249_vm0, %v224_v10 }
  0x86   : > { %v232_v13 = vpop.permute.xlu0 %231 }
  0x87   : > { %v242_v14 = vpop.permute.xlu1 %241 }
  0x8a   : > { %v237_v15 = vpop.permute.xlu0 %236 }
  0x8b   : > { %v247_v21 = vpop.permute.xlu1 %246 }
  0x8e   : > { %v360_v32 = vpop.permute.xlu0 %359 }
  0xe6   : > { %v519_v16 = vpop.f32.mrb[0].mxu0 }
  0xe7   : > { %v338_v17 = vadd.f32 %v519_v16, %v237_v15  ;;  %v332_v18 = vpop.f32.mrb[1].mxu0 }
  0xe8   : > { %v333_v19 = vadd.f32 %v332_v18, %v232_v13 }
  0xe9   : > { %v352_v20 = vmax.f32 %v338_v17, 0.0 }
  0xea   : > { %v351_v22 = vmax.f32 %v333_v19, 0.0  ;;  %v522_v23 = vpop.f32.mrb[2].mxu0 }
  0xeb   : > { %v348_v24 = vadd.f32 %v522_v23, %v247_v21  ;;  %v342_v25 = vpop.f32.mrb[3].mxu0 }
  0xec   : > { %v343_v26 = vadd.f32 %v342_v25, %v242_v14  ;;  %v535_v27 = vpack.c.bf16 %v352_v20, %v351_v22 }
  0xed   : > { %v354_v28 = vmax.f32 %v348_v24, 0.0 }
  0xee   : > { %v353_v29 = vmax.f32 %v343_v26, 0.0  ;;  %536 = vmatpush3.bf16.msra.mxu1 %v535_v27 }
  0xef   : > { %537 = vmatprep.subr.bf16.mxu1 %v563_v11 }
  0xf0   : > { %v538_v30 = vpack.c.bf16 %v354_v28, %v353_v29 }
  0xf2   : > { %539 = vmatpush3.bf16.msra.mxu1 %v538_v30 }
  0xf5   : > { %532 = vmatmul.mubr.msk.f32.vlgmr.msra.gmra.mrb[0].mxu1 %vm362_vm3, %v355_v31 }
 0x1c8   : > { %v432_v33 = vpop.f32.mrb[0].mxu1 }
 0x1c9   : > { %v433_v34 = vadd.f32 %v432_v33, %v360_v32  ;;  %v533_v35 = vpop.f32.mrb[1].mxu1 }
 0x1cb   : > { %436 = vst [vmem:[%s219_s23] sm:$0x3] %v433_v34 }
 0x1cc PF: > { %s15_s18 = sadd.s32 1, %s560_s18  }
 0x1cd   : > { %p12_p4 = scmp.ge.s32.totalorder %s15_s18, 4  }
 0x1cf   :  { %14 = sbr.rel (!%p12_p4) target bundleno = 1 (0x1), region = 70 }

</bundles_post_ra>
